<compile_context>
chip_gen: v7x
topology: tpu7x:2x2x1
jax: 0.10.0
libtpu: 0.0.40
codegen_flags: <defaults>
</compile_context>

<pallas_src>
import functools

import jax
import jax.numpy as jnp
from jax import lax
from jax.experimental import pallas as pl
from jax.experimental.pallas import tpu as pltpu

_LANE = 128


def _iou_kernel(x_ref, t_ref, out_ref, inter_acc, total_acc, *,
                rows, block_rows, blocks_per_slice, needs_mask, use_vreg_acc):
    p = pl.program_id(0)   # parallel slice (one per TensorCore on v7x)
    i = pl.program_id(1)   # sequential block index within the slice

    xf = x_ref[...].astype(jnp.float32)
    tf = t_ref[...].astype(jnp.float32)

    if needs_mask:
        g = p * blocks_per_slice + i          # global (unclamped) block id
        valid = rows - g * block_rows         # rows of this block holding real data
        row_id = lax.broadcasted_iota(jnp.int32, (block_rows, _LANE), 0)
        keep = row_id < valid                 # <=0 -> fully masked duplicate block
        xf = jnp.where(keep, xf, 0.0)         # where (not mul): NaN-safe vs garbage
        tf = jnp.where(keep, tf, 0.0)

    prod = xf * tf        # elementwise partial for intersection
    both = xf + tf        # elementwise partial for total

    if use_vreg_acc:
        @pl.when(i == 0)
        def _():
            inter_acc[...] = jnp.zeros_like(inter_acc)
            total_acc[...] = jnp.zeros_like(total_acc)

        # Reduce the big block to one vreg with VPU adds; keep scratch tiny.
        inter_acc[...] += prod.reshape(block_rows // 8, 8, _LANE).sum(axis=0)
        total_acc[...] += both.reshape(block_rows // 8, 8, _LANE).sum(axis=0)

        @pl.when(i == blocks_per_slice - 1)
        def _():
            out_ref[0, 0] = jnp.sum(inter_acc[...])
            out_ref[0, 1] = jnp.sum(total_acc[...])
    else:
        # Single full-array block whose row count is not a multiple of 8:
        # reduce it directly (this path runs exactly once, grid == (1, 1)).
        out_ref[0, 0] = jnp.sum(prod)
        out_ref[0, 1] = jnp.sum(both)


def _sublane_multiple(dtype):
    return {4: 8, 2: 16, 1: 32}.get(jnp.dtype(dtype).itemsize, 8)


def iou_loss(inputs, targets, smooth=1.0, *, max_block_bytes=1 << 20):
    """Pallas implementation of IoULoss.forward(inputs, targets, smooth)."""
    x = inputs.reshape(-1)
    t = targets.reshape(-1)
    n = x.shape[0]
    if n == 0:   # intersection = total = 0 -> IoU = smooth/smooth = 1 -> loss 0
        return jnp.float32(0.0)

    # Pad only a ragged tail (< 128 elements) so the flat array reshapes to
    # (rows, 128); zero padding is neutral for both sums.  When n % 128 == 0
    # (common case) there is no pad and no HBM copy at all.
    rem = n % _LANE
    if rem:
        x = jnp.pad(x, (0, _LANE - rem))
        t = jnp.pad(t, (0, _LANE - rem))
    rows = x.shape[0] // _LANE
    x2 = x.reshape(rows, _LANE)
    t2 = t.reshape(rows, _LANE)

    sub = max(_sublane_multiple(x2.dtype), _sublane_multiple(t2.dtype))
    itemsize = max(jnp.dtype(x2.dtype).itemsize, jnp.dtype(t2.dtype).itemsize)
    target_rows = max(sub, (max_block_bytes // (_LANE * itemsize)) // sub * sub)

    if rows <= target_rows:
        block_rows = rows            # single block == full array (always legal)
        total_blocks = 1
    else:
        block_rows = target_rows     # multiple of the dtype sublane tiling
        total_blocks = pl.cdiv(rows, block_rows)

    num_par = 2 if total_blocks >= 2 else 1          # use both TCs on v7x
    blocks_per_slice = pl.cdiv(total_blocks, num_par)

    needs_mask = (total_blocks * block_rows != rows
                  or blocks_per_slice * num_par != total_blocks)
    use_vreg_acc = (block_rows % 8 == 0)

    def in_map(p, i):
        # Clamp so a (possibly duplicated) trailing block never DMAs out of
        # bounds; its contribution is masked to zero inside the kernel.
        return (jnp.minimum(p * blocks_per_slice + i, total_blocks - 1), 0)

    kernel = functools.partial(
        _iou_kernel, rows=rows, block_rows=block_rows,
        blocks_per_slice=blocks_per_slice, needs_mask=needs_mask,
        use_vreg_acc=use_vreg_acc)

    partials = pl.pallas_call(
        kernel,
        out_shape=jax.ShapeDtypeStruct((num_par, 2), jnp.float32),
        grid_spec=pltpu.PrefetchScalarGridSpec(
            num_scalar_prefetch=0,
            grid=(num_par, blocks_per_slice),
            in_specs=[
                pl.BlockSpec((block_rows, _LANE), in_map),
                pl.BlockSpec((block_rows, _LANE), in_map),
            ],
            out_specs=pl.BlockSpec(
                (1, 2), lambda p, i: (p, 0),
                memory_space=pltpu.MemorySpace.SMEM),
            scratch_shapes=[
                pltpu.VMEM((8, _LANE), jnp.float32),
                pltpu.VMEM((8, _LANE), jnp.float32),
            ],
        ),
        compiler_params=pltpu.CompilerParams(
            dimension_semantics=("parallel", "arbitrary"),
            vmem_limit_bytes=32 * 1024 * 1024),
    )(x2, t2)

    intersection = jnp.sum(partials[:, 0])
    total = jnp.sum(partials[:, 1])
    union = total - intersection
    return 1.0 - (intersection + smooth) / (union + smooth)


def _iou_loss_ref(inputs, targets, smooth=1.0):
    x = inputs.reshape(-1).astype(jnp.float32)
    t = targets.reshape(-1).astype(jnp.float32)
    intersection = jnp.sum(x * t)
    total = jnp.sum(x + t)
    union = total - intersection
    return 1.0 - (intersection + smooth) / (union + smooth)


if __name__ == "__main__":
    key = jax.random.PRNGKey(0)
    k1, k2, k3, k4 = jax.random.split(key, 4)

    # Module has no learnable parameters; inputs mimic sigmoid predictions,
    # targets a binary mask, NCHW shape (2, 4, 16, 16).
    inputs = jax.nn.sigmoid(jax.random.normal(k1, (2, 4, 16, 16), jnp.float32))
    targets = (jax.random.uniform(k2, (2, 4, 16, 16)) > 0.5).astype(jnp.float32)

    loss = jax.block_until_ready(iou_loss(inputs, targets, smooth=1.0))
    ref = jax.block_until_ready(_iou_loss_ref(inputs, targets, smooth=1.0))
    assert jnp.allclose(loss, ref, rtol=1e-5, atol=1e-5), (loss, ref)

    # Extra check: ragged element count (not a multiple of 128) + tiny blocks
    # so the multi-block, masked, clamped, 2-way-parallel accumulation path is
    # exercised.
    inputs2 = jax.nn.sigmoid(jax.random.normal(k3, (2, 3, 50, 17), jnp.float32))
    targets2 = (jax.random.uniform(k4, (2, 3, 50, 17)) > 0.5).astype(jnp.float32)
    loss2 = jax.block_until_ready(
        iou_loss(inputs2, targets2, smooth=1.0, max_block_bytes=8 * _LANE * 4))
    ref2 = jax.block_until_ready(_iou_loss_ref(inputs2, targets2, smooth=1.0))
    assert jnp.allclose(loss2, ref2, rtol=1e-5, atol=1e-5), (loss2, ref2)

    print("KERNEL_OK")
</pallas_src>

<mosaic_0001>
module attributes {stable_mosaic.version = 11 : i64} {
  func.func @_iou_kernel(%arg0: i32, %arg1: i32, %arg2: memref<16x128xf32, #tpu.memory_space<vmem>>, %arg3: memref<16x128xf32, #tpu.memory_space<vmem>>, %arg4: memref<1x2xf32, #tpu.memory_space<smem>>, %arg5: memref<8x128xf32, #tpu.memory_space<vmem>>, %arg6: memref<8x128xf32, #tpu.memory_space<vmem>>) attributes {dimension_semantics = [#tpu.dimension_semantics<parallel>, #tpu.dimension_semantics<arbitrary>], iteration_bounds = array<i64: 1, 1>, scalar_prefetch = 0 : i64, scratch_operands = 2 : i64, tpu.core_type = #tpu.core_type<tc>, window_params = [{transform_indices = @transform_0, window_bounds = array<i64: 16, 128>}, {transform_indices = @transform_1, window_bounds = array<i64: 16, 128>}, {transform_indices = @transform_2, window_bounds = array<i64: 1, 2>}]} {
    %c0 = arith.constant 0 : index
    %c0_0 = arith.constant 0 : index
    %0 = vector.load %arg2[%c0, %c0_0] : memref<16x128xf32, #tpu.memory_space<vmem>>, vector<16x128xf32>
    %c0_1 = arith.constant 0 : index
    %c0_2 = arith.constant 0 : index
    %1 = vector.load %arg3[%c0_1, %c0_2] : memref<16x128xf32, #tpu.memory_space<vmem>>, vector<16x128xf32>
    %2 = arith.mulf %0, %1 : vector<16x128xf32>
    %3 = arith.addf %0, %1 : vector<16x128xf32>
    %c0_i32 = arith.constant 0 : i32
    %4 = arith.cmpi eq, %arg1, %c0_i32 : i32
    %5 = arith.extui %4 : i1 to i32
    %c0_i32_3 = arith.constant 0 : i32
    %6 = arith.cmpi ne, %5, %c0_i32_3 : i32
    scf.if %6 {
      %cst_15 = arith.constant 0.000000e+00 : f32
      %20 = vector.broadcast %cst_15 : f32 to vector<8x128xf32>
      %c0_16 = arith.constant 0 : index
      %c0_17 = arith.constant 0 : index
      %21 = vector.load %arg5[%c0_16, %c0_17] : memref<8x128xf32, #tpu.memory_space<vmem>>, vector<8x128xf32>
      tpu.vector_store %arg5[%c0_16, %c0_17], %20 {strides = array<i32>} : memref<8x128xf32, #tpu.memory_space<vmem>>, vector<8x128xf32>,
      %cst_18 = arith.constant 0.000000e+00 : f32
      %22 = vector.broadcast %cst_18 : f32 to vector<8x128xf32>
      %c0_19 = arith.constant 0 : index
      %c0_20 = arith.constant 0 : index
      %23 = vector.load %arg6[%c0_19, %c0_20] : memref<8x128xf32, #tpu.memory_space<vmem>>, vector<8x128xf32>
      tpu.vector_store %arg6[%c0_19, %c0_20], %22 {strides = array<i32>} : memref<8x128xf32, #tpu.memory_space<vmem>>, vector<8x128xf32>,
    } else {
    }
    %c0_4 = arith.constant 0 : index
    %c0_5 = arith.constant 0 : index
    %7 = vector.load %arg5[%c0_4, %c0_5] : memref<8x128xf32, #tpu.memory_space<vmem>>, vector<8x128xf32>
    %8 = vector.shape_cast %2 : vector<16x128xf32> to vector<2x8x128xf32>
    %cst = arith.constant dense<0.000000e+00> : vector<8x128xf32>
    %9 = vector.multi_reduction <add>, %8, %cst [0] : vector<2x8x128xf32> to vector<8x128xf32>
    %10 = arith.addf %7, %9 : vector<8x128xf32>
    %c0_6 = arith.constant 0 : index
    %c0_7 = arith.constant 0 : index
    %11 = vector.load %arg5[%c0_6, %c0_7] : memref<8x128xf32, #tpu.memory_space<vmem>>, vector<8x128xf32>
    tpu.vector_store %arg5[%c0_6, %c0_7], %10 {strides = array<i32>} : memref<8x128xf32, #tpu.memory_space<vmem>>, vector<8x128xf32>,
    %c0_8 = arith.constant 0 : index
    %c0_9 = arith.constant 0 : index
    %12 = vector.load %arg6[%c0_8, %c0_9] : memref<8x128xf32, #tpu.memory_space<vmem>>, vector<8x128xf32>
    %13 = vector.shape_cast %3 : vector<16x128xf32> to vector<2x8x128xf32>
    %cst_10 = arith.constant dense<0.000000e+00> : vector<8x128xf32>
    %14 = vector.multi_reduction <add>, %13, %cst_10 [0] : vector<2x8x128xf32> to vector<8x128xf32>
    %15 = arith.addf %12, %14 : vector<8x128xf32>
    %c0_11 = arith.constant 0 : index
    %c0_12 = arith.constant 0 : index
    %16 = vector.load %arg6[%c0_11, %c0_12] : memref<8x128xf32, #tpu.memory_space<vmem>>, vector<8x128xf32>
    tpu.vector_store %arg6[%c0_11, %c0_12], %15 {strides = array<i32>} : memref<8x128xf32, #tpu.memory_space<vmem>>, vector<8x128xf32>,
    %c0_i32_13 = arith.constant 0 : i32
    %17 = arith.cmpi eq, %arg1, %c0_i32_13 : i32
    %18 = arith.extui %17 : i1 to i32
    %c0_i32_14 = arith.constant 0 : i32
    %19 = arith.cmpi ne, %18, %c0_i32_14 : i32
    scf.if %19 {
      %c0_15 = arith.constant 0 : index
      %c0_16 = arith.constant 0 : index
      %20 = vector.load %arg5[%c0_15, %c0_16] : memref<8x128xf32, #tpu.memory_space<vmem>>, vector<8x128xf32>
      %21 = vector.shape_cast %20 : vector<8x128xf32> to vector<1x8x128xf32>
      %cst_17 = arith.constant dense<0.000000e+00> : vector<1xf32>
      %22 = vector.multi_reduction <add>, %21, %cst_17 [1, 2] : vector<1x8x128xf32> to vector<1xf32>
      %23 = vector.shape_cast %22 : vector<1xf32> to vector<1x1x1xf32>
      %24 = vector.extract %23[0, 0, 0] : f32 from vector<1x1x1xf32>
      %c0_18 = arith.constant 0 : index
      %c0_19 = arith.constant 0 : index
      %25 = memref.load %arg4[%c0_18, %c0_19] : memref<1x2xf32, #tpu.memory_space<smem>>
      memref.store %24, %arg4[%c0_18, %c0_19] : memref<1x2xf32, #tpu.memory_space<smem>>
      %c0_20 = arith.constant 0 : index
      %c0_21 = arith.constant 0 : index
      %26 = vector.load %arg6[%c0_20, %c0_21] : memref<8x128xf32, #tpu.memory_space<vmem>>, vector<8x128xf32>
      %27 = vector.shape_cast %26 : vector<8x128xf32> to vector<1x8x128xf32>
      %cst_22 = arith.constant dense<0.000000e+00> : vector<1xf32>
      %28 = vector.multi_reduction <add>, %27, %cst_22 [1, 2] : vector<1x8x128xf32> to vector<1xf32>
      %29 = vector.shape_cast %28 : vector<1xf32> to vector<1x1x1xf32>
      %30 = vector.extract %29[0, 0, 0] : f32 from vector<1x1x1xf32>
      %c0_23 = arith.constant 0 : index
      %c1 = arith.constant 1 : index
      %31 = memref.load %arg4[%c0_23, %c1] : memref<1x2xf32, #tpu.memory_space<smem>>
      memref.store %30, %arg4[%c0_23, %c1] : memref<1x2xf32, #tpu.memory_space<smem>>
    } else {
    }
    return
  }
  func.func @transform_0(%arg0: i32, %arg1: i32) -> (i32, i32) {
    %c1_i32 = arith.constant 1 : i32
    %0 = arith.muli %arg0, %c1_i32 : i32
    %1 = arith.addi %0, %arg1 : i32
    %c0_i32 = arith.constant 0 : i32
    %2 = arith.minsi %1, %c0_i32 : i32
    %c0_i32_0 = arith.constant 0 : i32
    %c0_i32_1 = arith.constant 0 : i32
    return %2, %c0_i32_0 : i32, i32
  }
  func.func @transform_1(%arg0: i32, %arg1: i32) -> (i32, i32) {
    %c1_i32 = arith.constant 1 : i32
    %0 = arith.muli %arg0, %c1_i32 : i32
    %1 = arith.addi %0, %arg1 : i32
    %c0_i32 = arith.constant 0 : i32
    %2 = arith.minsi %1, %c0_i32 : i32
    %c0_i32_0 = arith.constant 0 : i32
    %c0_i32_1 = arith.constant 0 : i32
    return %2, %c0_i32_0 : i32, i32
  }
  func.func @transform_2(%arg0: i32, %arg1: i32) -> (i32, i32) {
    %c0_i32 = arith.constant 0 : i32
    %c0_i32_0 = arith.constant 0 : i32
    return %arg0, %c0_i32 : i32, i32
  }
}

</mosaic_0001>

<bundles_post_ra>
// kernel: tpu_custom_call.1
= control target key start
LH: loop header
LB: loop body
LE: loop exit
PB: predicated region body
PF: predicated region fallthrough
CT: control target
= control target key end

     0   :  { %7 = vsyncpa [#allocation5], 0  ;;  %s253_s0 = inlined_call_operand.hbm [shape: f32[16,128], index: 0, kind: input, shape index: {}]   ;;  %s254_s1 = inlined_call_operand.hbm [shape: f32[16,128], index: 1, kind: input, shape index: {}]   ;;  %s255_s2 = inlined_call_operand.hbm [shape: f32[1,2], index: 2, kind: output, shape index: {}]  }
   0x1   :  { %8 = vsyncpa [#allocation8], 0 }
   0x2   :  { %9 = vsyncpa [#allocation6], 0  ;;  %s197_s9 = smov [#allocation4]   ;;  %s137_s13 = scalar_lea.hbm %s253_s0, 256 }
   0x3   :  { %s21_s10 = sshll.u32 %s197_s9, 4  ;;  %p138_p0 = scmp.ne.s32.totalorder %s253_s0, %s137_s13  ;;  %s22_s10 = int_to_ptr.vmem [resolvable:$true] %s21_s10 }
   0x4   :  { %p141_p1 = scmp.lt.u32.totalorder %s137_s13, %s253_s0 }
   0x6   :  { %p143_p2 = pnand %p141_p1, %p138_p0 }
   0x8   :  { %146 = shalt.err (!%p143_p2)
}
   0x9   :  { %s147_s18 = scalar_lea.vmem %s22_s10, 256  ;;  %p152_p4 = scmp.lt.s32.totalorder %s22_s10, %s22_s10 }
   0xa   :  { %p148_p3 = scmp.ne.s32.totalorder %s22_s10, %s147_s18  ;;  %p153_p5 = scmp.lt.s32.totalorder %s147_s18, %s147_s18 }
   0xc   :  { %p154_p6 = por %p153_p5, %p152_p4 }
   0xe   :  { %p155_p7 = pnand %p154_p6, %p148_p3 }
  0x10   :  { %158 = shalt.err (!%p155_p7)
}
  0x11   :  { %s198_s19 = smov 128   ;;  %s199_s20 = smov 8  }
  0x12   :  { %27 = dma.hbm_to_vmem [thread:$0]  %s253_s0, 256, %s22_s10, [#allocation5], %s198_s19, %s198_s19, %s199_s20  }
  0x13   :  { %s200_s23 = smov [#allocation7]   ;;  %s159_s27 = scalar_lea.hbm %s254_s1, 256 }
  0x14   :  { %s39_s24 = sshll.u32 %s200_s23, 4  ;;  %p160_p8 = scmp.ne.s32.totalorder %s254_s1, %s159_s27  ;;  %s40_s24 = int_to_ptr.vmem [resolvable:$true] %s39_s24 }
  0x15   :  { %p163_p9 = scmp.lt.u32.totalorder %s159_s27, %s254_s1 }
  0x17   :  { %p165_p10 = pnand %p163_p9, %p160_p8 }
  0x19   :  { %168 = shalt.err (!%p165_p10)
}
  0x1a   :  { %s169_s4 = scalar_lea.vmem %s40_s24, 256  ;;  %p174_p12 = scmp.lt.s32.totalorder %s40_s24, %s40_s24 }
  0x1b   :  { %p170_p11 = scmp.ne.s32.totalorder %s40_s24, %s169_s4  ;;  %p175_p13 = scmp.lt.s32.totalorder %s169_s4, %s169_s4 }
  0x1d   :  { %p176_p0 = por %p175_p13, %p174_p12 }
  0x1f   :  { %p177_p1 = pnand %p176_p0, %p170_p11 }
  0x21   :  { %180 = shalt.err (!%p177_p1)
}
  0x22   :  { %45 = dma.hbm_to_vmem [thread:$0]  %s254_s1, 256, %s40_s24, [#allocation8], %s198_s19, %s198_s19, %s199_s20  }
  0x23   :  { %191 = dma.done.wait [#allocation5], 256  }
  0x24   :  { %192 = vsyncadd [#allocation5], 4294967040 }
  0x25   :  { %193 = dma.done.wait [#allocation8], 256  }
  0x26   :  { %194 = vsyncadd [#allocation8], 4294967040  ;;  %v60_v0 = vld [vmem:[#allocation4] sm:$0xff]  ;;  %v61_v1 = vld [vmem:[#allocation4 + $0x8] sm:$0xff]  ;;  %s181_s9 = scalar_lea.hbm %s255_s2, 16 }
  0x27   :  { %v62_v2 = vld [vmem:[#allocation7] sm:$0xff]  ;;  %v63_v3 = vld [vmem:[#allocation7 + $0x8] sm:$0xff]  ;;  %p182_p2 = scmp.ne.s32.totalorder %s255_s2, %s181_s9  ;;  %p185_p3 = scmp.lt.u32.totalorder %s181_s9, %s255_s2 }
  0x28   :  { %v64_v4 = vmul.f32 %v62_v2, %v60_v0  ;;  %v65_v5 = vmul.f32 %v63_v3, %v61_v1  ;;  %v66_v6 = vadd.f32 %v62_v2, %v60_v0  ;;  %v67_v7 = vadd.f32 %v63_v3, %v61_v1 }
  0x29   :  { %p187_p4 = pnand %p185_p3, %p182_p2 }
  0x2a   :  { %v75_v8 = vadd.f32 %v65_v5, %v64_v4  ;;  %v79_v9 = vadd.f32 %v67_v7, %v66_v6 }
  0x2c   :  { %86 = vadd.xlane.f32.xlu0 %v75_v8 }
  0x30   :  { %98 = vadd.xlane.f32.xlu0 %v79_v9 }
  0xb9   :  { %v87_v10 = vpop.xlane.xlu0 %86 }
  0xba   :  { %v88_v11 = vrot.slane %v87_v10, 4 }
  0xbc   :  { %v89_v12 = vadd.f32 %v88_v11, %v87_v10 }
  0xbd   :  { %v99_v13 = vpop.xlane.xlu0 %98 }
  0xbe   :  { %v90_v14 = vrot.slane %v89_v12, 2  ;;  %v100_v15 = vrot.slane %v99_v13, 4 }
  0xc0   :  { %v101_v16 = vadd.f32 %v100_v15, %v99_v13  ;;  %v91_v17 = vadd.f32 %v90_v14, %v89_v12 }
  0xc2   :  { %v102_v18 = vrot.slane %v101_v16, 2  ;;  %v92_v19 = vrot.slane %v91_v17, 1 }
  0xc4   :  { %v103_v20 = vadd.f32 %v102_v18, %v101_v16  ;;  %v93_v21 = vadd.f32 %v92_v19, %v91_v17 }
  0xc6   :  { %128 = vpush %v93_v21  ;;  %v104_v22 = vrot.slane %v103_v20, 1 }
  0xc8   :  { %v105_v23 = vadd.f32 %v104_v22, %v103_v20 }
  0xca   :  { %130 = vpush %v105_v23 }
  0xf7   :  { %s129_s1 = spop %128 }
  0xf8   :  { %96 = sst [smem:[#allocation9]] %s129_s1 }
  0xfb   :  { %s131_s6 = spop %130 }
  0xfc   :  { %108 = sst [smem:[#allocation9 + $0x1]] %s131_s6 }
  0xfd   :  { %190 = shalt.err (!%p187_p4)
}
  0xfe   :  { %s201_s14 = smov [#allocation9]  }
  0xff   :  { %116 = dma.smem_to_hbm %s201_s14, 16, %s255_s2, [#allocation6]  }
 0x100   :  { %195 = dma.done.wait [#allocation6], 16  }
 0x101   :  { %196 = vsyncadd [#allocation6], 4294967280 }
 0x102   :  { %120 = sfence }
 0x103   :  { %121 = vsyncpa [#allocation5], 1 }
 0x104   :  { %122 = vsyncpa [#allocation8], 1 }
 0x105   :  { %123 = vsyncpa [#allocation6], 1 }

</bundles_post_ra>
